<compile_context>
chip_gen: v6e
topology: v6e:2x2x1
jax: 0.10.0
libtpu: 0.0.40
codegen_flags: <defaults>
</compile_context>

<pallas_src>
import functools

import jax
import jax.numpy as jnp
import numpy as np
from jax.experimental import pallas as pl
from jax.experimental.pallas import tpu as pltpu


# ---------------------------------------------------------------------------
# Pass A: coordinate pooling, lane-dense.
#   x block (ct, H*W) -> pooled-over-W (H, ct) and pooled-over-H (W, ct) written
#   straight into (N*H, C) / (N*W, C) arrays (lane dim = C).
# ---------------------------------------------------------------------------
def _pool_kernel(x_ref, avg_h_ref, avg_w_ref, ph_ref, pw_ref):
    xf = x_ref[...].astype(jnp.float32)                         # (ct, H*W)
    # Means as matmuls against constant averaging matrices (MXU is idle here).
    ph_ct = jnp.dot(xf, avg_h_ref[...], preferred_element_type=jnp.float32)  # (ct, H)
    pw_ct = jnp.dot(xf, avg_w_ref[...], preferred_element_type=jnp.float32)  # (ct, W)
    # Tiny XLU transposes, hidden under the x DMA.
    ph_ref[...] = ph_ct.T                                       # (H, ct)
    pw_ref[...] = pw_ct.T                                       # (W, ct)


# ---------------------------------------------------------------------------
# Pass B: 1x1 conv -> BatchNorm (batch stats) -> ReLU -> F_h/F_w -> sigmoid.
# Single fused matmul + single column reduction over the concatenated branches.
# ---------------------------------------------------------------------------
def _excite_kernel(ph_ref, pw_ref, w1_ref, wh_ref, ww_ref, g_ref, b_ref,
                   sh_ref, sw_ref, *, eps, nh):
    pcat = jnp.concatenate([ph_ref[...], pw_ref[...]], axis=0)  # (N*(H+W), C)
    y = jnp.dot(pcat, w1_ref[...], preferred_element_type=jnp.float32)  # (., Cr)

    mu = jnp.mean(y, axis=0, keepdims=True)                     # batch stats over
    var = jnp.mean((y - mu) ** 2, axis=0, keepdims=True)        # N*(H+W) positions
    y = (y - mu) * jax.lax.rsqrt(var + eps) * g_ref[...] + b_ref[...]
    y = jnp.maximum(y, 0.0)                                     # BN + ReLU

    yh, yw = y[:nh], y[nh:]                                     # split H / W branch
    sh_ref[...] = jax.nn.sigmoid(
        jnp.dot(yh, wh_ref[...], preferred_element_type=jnp.float32)
    ).astype(sh_ref.dtype)                                      # (N*H, C)
    sw_ref[...] = jax.nn.sigmoid(
        jnp.dot(yw, ww_ref[...], preferred_element_type=jnp.float32)
    ).astype(sw_ref.dtype)                                      # (N*W, C)


# ---------------------------------------------------------------------------
# Pass C: gating.  Gates arrive as (H, ct)/(W, ct) blocks; 0/1 scatter matmuls
# broadcast them across the flat H*W lane axis, then one elementwise multiply.
# ---------------------------------------------------------------------------
def _gate_kernel(x_ref, sh_ref, sw_ref, rep_h_ref, rep_w_ref, o_ref):
    sh_t = sh_ref[...].astype(jnp.float32).T                    # (ct, H)  tiny xpose
    sw_t = sw_ref[...].astype(jnp.float32).T                    # (ct, W)
    # gh[c, h*W + w] = s_h[h, c];  gw[c, h*W + w] = s_w[w, c]   (exact 0/1 matmuls)
    gh = jnp.dot(sh_t, rep_h_ref[...], preferred_element_type=jnp.float32)  # (ct, HW)
    gw = jnp.dot(sw_t, rep_w_ref[...], preferred_element_type=jnp.float32)  # (ct, HW)
    o_ref[...] = (x_ref[...].astype(jnp.float32) * gh * gw).astype(o_ref.dtype)


def _pick_c_tile(C, bytes_per_channel, budget_bytes, n_parallel_other=1,
                 min_grid_steps=2):
    """Largest channel tile whose (ct, H*W) block fits the budget.

    ct must be a divisor of C and either equal C or a multiple of 128 so every
    BlockSpec keeps its last dim (8,128)-legal and lane-dense.  Keeps at least
    `min_grid_steps` total parallel grid steps when possible (megacore on v7x).
    """
    cands = [c for c in range(1, C + 1)
             if C % c == 0 and (c == C or c % 128 == 0)]
    fitting = [c for c in cands if c * bytes_per_channel <= budget_bytes]
    fitting = fitting or [min(cands)]
    good = [c for c in fitting if n_parallel_other * (C // c) >= min_grid_steps]
    return max(good or fitting)


def ca_block_pallas(x, w1_t, wh_t, ww_t, gamma, beta, eps=1e-5):
    """Coordinate Attention forward. x: (N, C, H, W). Returns (N, C, H, W)."""
    N, C, H, W = x.shape
    Cr = w1_t.shape[1]
    HW = H * W
    itemsize = jnp.dtype(x.dtype).itemsize

    lane_dense_ok = (
        HW % 128 == 0                              # flat H*W lane fold is legal
        and (H % 8 == 0 or N == 1)                 # (H, ct)/(W, ct) pooled blocks
        and (W % 8 == 0 or N == 1)
        and HW * (H + W) * 4 <= (4 << 20)          # constant avg/scatter matrices
    )
    if not lane_dense_ok:
        # TODO(synk): shapes whose H*W lane fold is not 128-aligned (or whose
        # averaging matrices would be large) fall back to the plain XLA path.
        return _reference(x, w1_t, wh_t, ww_t, gamma, beta, eps)

    # ---- per-generation VMEM budget (v5e/v6e: 128 MiB, v7x: 64 MiB per TC) ----
    try:
        vmem_cap = int(pltpu.get_tpu_info().vmem_capacity_bytes)
    except Exception:
        vmem_cap = 64 << 20                        # conservative (v7x) fallback
    vmem_limit = min((vmem_cap * 3) // 4, 100 << 20)
    block_budget = min(vmem_limit // 10, 8 << 20)  # ~4.8 MiB on v7x, 8 MiB v5e/v6e

    ct = _pick_c_tile(C, HW * itemsize, block_budget, n_parallel_other=N)
    grid = (N, C // ct)
    cparams = pltpu.CompilerParams(
        dimension_semantics=("parallel", "parallel"),   # shard across TCs on v7x
        vmem_limit_bytes=vmem_limit)

    gate_dtype = x.dtype if x.dtype == jnp.bfloat16 else jnp.float32

    # Constant averaging (pass A) and 0/1 scatter (pass C) matrices — a few KB.
    hw = np.arange(HW)
    avg_h_np = (hw[:, None] // W == np.arange(H)[None, :]).astype(np.float32) / W
    avg_w_np = (hw[:, None] % W == np.arange(W)[None, :]).astype(np.float32) / H
    avg_h = jnp.asarray(avg_h_np)                  # (HW, H)
    avg_w = jnp.asarray(avg_w_np)                  # (HW, W)
    rep_h = jnp.asarray((avg_h_np * W).T)          # (H, HW)  0/1
    rep_w = jnp.asarray((avg_w_np * H).T)          # (W, HW)  0/1

    x_flat = x.reshape(N, C, HW)                   # free contiguous view

    # ---- Pass A: pooling (one streaming, lane-dense read of x) ---------------
    pooled_h, pooled_w = pl.pallas_call(
        _pool_kernel,
        out_shape=(jax.ShapeDtypeStruct((N * H, C), jnp.float32),
                   jax.ShapeDtypeStruct((N * W, C), jnp.float32)),
        grid=grid,
        in_specs=[
            pl.BlockSpec((None, ct, HW), lambda n, c: (n, c, 0)),   # x block
            pl.BlockSpec((HW, H), lambda n, c: (0, 0)),             # avg over W
            pl.BlockSpec((HW, W), lambda n, c: (0, 0)),             # avg over H
        ],
        out_specs=[pl.BlockSpec((H, ct), lambda n, c: (n, c)),
                   pl.BlockSpec((W, ct), lambda n, c: (n, c))],
        compiler_params=cparams,
    )(x_flat, avg_h, avg_w)

    # ---- Pass B: conv / BN / ReLU / F_h / F_w / sigmoid (KB-sized, grid=(1,)) -
    sh2, sw2 = pl.pallas_call(
        functools.partial(_excite_kernel, eps=eps, nh=N * H),
        out_shape=(jax.ShapeDtypeStruct((N * H, C), gate_dtype),
                   jax.ShapeDtypeStruct((N * W, C), gate_dtype)),
        grid=(1,),
        in_specs=[
            pl.BlockSpec((N * H, C), lambda i: (0, 0)),   # pooled H-branch
            pl.BlockSpec((N * W, C), lambda i: (0, 0)),   # pooled W-branch
            pl.BlockSpec((C, Cr), lambda i: (0, 0)),      # conv weight^T
            pl.BlockSpec((Cr, C), lambda i: (0, 0)),      # F_h  weight^T
            pl.BlockSpec((Cr, C), lambda i: (0, 0)),      # F_w  weight^T
            pl.BlockSpec((1, Cr), lambda i: (0, 0)),      # BN gamma
            pl.BlockSpec((1, Cr), lambda i: (0, 0)),      # BN beta
        ],
        out_specs=[pl.BlockSpec((N * H, C), lambda i: (0, 0)),
                   pl.BlockSpec((N * W, C), lambda i: (0, 0))],
        compiler_params=pltpu.CompilerParams(dimension_semantics=("arbitrary",)),
    )(pooled_h, pooled_w, w1_t, wh_t, ww_t, gamma, beta)

    # ---- Pass C: gating (lane-dense read of x + write of out) ----------------
    out_flat = pl.pallas_call(
        _gate_kernel,
        out_shape=jax.ShapeDtypeStruct((N, C, HW), x.dtype),
        grid=grid,
        in_specs=[
            pl.BlockSpec((None, ct, HW), lambda n, c: (n, c, 0)),   # x block
            pl.BlockSpec((H, ct), lambda n, c: (n, c)),             # s_h gate
            pl.BlockSpec((W, ct), lambda n, c: (n, c)),             # s_w gate
            pl.BlockSpec((H, HW), lambda n, c: (0, 0)),             # scatter over W
            pl.BlockSpec((W, HW), lambda n, c: (0, 0)),             # scatter over H
        ],
        out_specs=pl.BlockSpec((None, ct, HW), lambda n, c: (n, c, 0)),
        compiler_params=cparams,
    )(x_flat, sh2, sw2, rep_h, rep_w)

    return out_flat.reshape(N, C, H, W)


def _reference(x, w1_t, wh_t, ww_t, gamma, beta, eps=1e-5):
    """Pure-JAX reference mirroring the PyTorch forward (training-mode BN)."""
    N, C, H, W = x.shape
    x_h = jnp.mean(x, axis=3, keepdims=True).transpose(0, 1, 3, 2)   # (N,C,1,H)
    x_w = jnp.mean(x, axis=2, keepdims=True)                         # (N,C,1,W)
    cat = jnp.concatenate([x_h, x_w], axis=3)                        # (N,C,1,H+W)
    y = jnp.einsum('rc,ncst->nrst', w1_t.T, cat)                     # (N,Cr,1,H+W)
    mu = jnp.mean(y, axis=(0, 2, 3), keepdims=True)
    var = jnp.mean((y - mu) ** 2, axis=(0, 2, 3), keepdims=True)
    y = (y - mu) / jnp.sqrt(var + eps) * gamma.reshape(1, -1, 1, 1) \
        + beta.reshape(1, -1, 1, 1)
    y = jnp.maximum(y, 0.0)
    yh, yw = y[..., :H], y[..., H:]
    s_h = jax.nn.sigmoid(jnp.einsum('cr,nrst->ncts', wh_t.T, yh))    # (N,C,H,1)
    s_w = jax.nn.sigmoid(jnp.einsum('cr,nrst->ncst', ww_t.T, yw))    # (N,C,1,W)
    return x * s_h * s_w


if __name__ == "__main__":
    # Small shapes consistent with the module: channel must be >= reduction.
    N, C, H, W = 2, 32, 16, 16
    reduction = 16
    Cr = C // reduction

    key = jax.random.PRNGKey(0)
    k_x, k1, k2, k3 = jax.random.split(key, 4)

    x = jax.random.normal(k_x, (N, C, H, W), dtype=jnp.float32)

    # Deterministic 1x1 conv weights, pre-transposed for the (positions, channels)
    # matmul layout used by the kernels.
    w1_t = (jax.random.uniform(k1, (C, Cr), jnp.float32, -1.0, 1.0)
            / np.sqrt(C)).astype(jnp.float32)          # conv: (Cr,C,1,1) -> (C,Cr)
    wh_t = (jax.random.uniform(k2, (Cr, C), jnp.float32, -1.0, 1.0)
            / np.sqrt(Cr)).astype(jnp.float32)         # F_h:  (C,Cr,1,1) -> (Cr,C)
    ww_t = (jax.random.uniform(k3, (Cr, C), jnp.float32, -1.0, 1.0)
            / np.sqrt(Cr)).astype(jnp.float32)         # F_w:  (C,Cr,1,1) -> (Cr,C)

    # nn.BatchNorm2d default affine init.
    gamma = jnp.ones((1, Cr), jnp.float32)
    beta = jnp.zeros((1, Cr), jnp.float32)

    out = jax.block_until_ready(ca_block_pallas(x, w1_t, wh_t, ww_t, gamma, beta))

    ref = _reference(x, w1_t, wh_t, ww_t, gamma, beta)
    np.testing.assert_allclose(np.asarray(out), np.asarray(ref),
                               rtol=1e-4, atol=1e-5)

    print("KERNEL_OK")
</pallas_src>

<mosaic_0001>
module attributes {stable_mosaic.version = 11 : i64} {
  func.func @_pool_kernel(%arg0: i32, %arg1: i32, %arg2: memref<1x32x256xf32, #tpu.memory_space<vmem>>, %arg3: memref<256x16xf32, #tpu.memory_space<vmem>>, %arg4: memref<256x16xf32, #tpu.memory_space<vmem>>, %arg5: memref<16x32xf32, #tpu.memory_space<vmem>>, %arg6: memref<16x32xf32, #tpu.memory_space<vmem>>) attributes {dimension_semantics = [#tpu.dimension_semantics<parallel>, #tpu.dimension_semantics<parallel>], iteration_bounds = array<i64: 2, 1>, scalar_prefetch = 0 : i64, scratch_operands = 0 : i64, tpu.core_type = #tpu.core_type<tc>, window_params = [{transform_indices = @transform_0, window_bounds = array<i64: 1, 32, 256>}, {pipeline_mode = #tpu.pipeline_mode<synchronous>, transform_indices = @transform_1, window_bounds = array<i64: 256, 16>}, {pipeline_mode = #tpu.pipeline_mode<synchronous>, transform_indices = @transform_2, window_bounds = array<i64: 256, 16>}, {transform_indices = @transform_3, window_bounds = array<i64: 16, 32>}, {transform_indices = @transform_4, window_bounds = array<i64: 16, 32>}]} {
    %c0 = arith.constant 0 : index
    %c0_0 = arith.constant 0 : index
    %c0_1 = arith.constant 0 : index
    %0 = vector.load %arg2[%c0, %c0_0, %c0_1] : memref<1x32x256xf32, #tpu.memory_space<vmem>>, vector<1x32x256xf32>
    %1 = vector.shape_cast %0 : vector<1x32x256xf32> to vector<32x256xf32>
    %c0_2 = arith.constant 0 : index
    %c0_3 = arith.constant 0 : index
    %2 = vector.load %arg3[%c0_2, %c0_3] : memref<256x16xf32, #tpu.memory_space<vmem>>, vector<256x16xf32>
    %cst = arith.constant dense<0.000000e+00> : vector<32x16xf32>
    %3 = tpu.matmul %1, %2, %cst {dimension_numbers = #tpu.dot_dimension_numbers<[1], [0], [0], [1], [0, 0, 1, 1], [], []>} : vector<32x256xf32>, vector<256x16xf32>, vector<32x16xf32> -> vector<32x16xf32>
    %c0_4 = arith.constant 0 : index
    %c0_5 = arith.constant 0 : index
    %4 = vector.load %arg4[%c0_4, %c0_5] : memref<256x16xf32, #tpu.memory_space<vmem>>, vector<256x16xf32>
    %cst_6 = arith.constant dense<0.000000e+00> : vector<32x16xf32>
    %5 = tpu.matmul %1, %4, %cst_6 {dimension_numbers = #tpu.dot_dimension_numbers<[1], [0], [0], [1], [0, 0, 1, 1], [], []>} : vector<32x256xf32>, vector<256x16xf32>, vector<32x16xf32> -> vector<32x16xf32>
    %6 = tpu.transpose %3, [1, 0] : vector<32x16xf32> -> vector<16x32xf32>
    %c0_7 = arith.constant 0 : index
    %c0_8 = arith.constant 0 : index
    %7 = vector.load %arg5[%c0_7, %c0_8] : memref<16x32xf32, #tpu.memory_space<vmem>>, vector<16x32xf32>
    tpu.vector_store %arg5[%c0_7, %c0_8], %6 {strides = array<i32>} : memref<16x32xf32, #tpu.memory_space<vmem>>, vector<16x32xf32>,
    %8 = tpu.transpose %5, [1, 0] : vector<32x16xf32> -> vector<16x32xf32>
    %c0_9 = arith.constant 0 : index
    %c0_10 = arith.constant 0 : index
    %9 = vector.load %arg6[%c0_9, %c0_10] : memref<16x32xf32, #tpu.memory_space<vmem>>, vector<16x32xf32>
    tpu.vector_store %arg6[%c0_9, %c0_10], %8 {strides = array<i32>} : memref<16x32xf32, #tpu.memory_space<vmem>>, vector<16x32xf32>,
    return
  }
  func.func @transform_0(%arg0: i32, %arg1: i32) -> (i32, i32, i32) {
    %c0_i32 = arith.constant 0 : i32
    %c0_i32_0 = arith.constant 0 : i32
    return %arg0, %arg1, %c0_i32 : i32, i32, i32
  }
  func.func @transform_1(%arg0: i32, %arg1: i32) -> (i32, i32) {
    %c0_i32 = arith.constant 0 : i32
    %c0_i32_0 = arith.constant 0 : i32
    %c0_i32_1 = arith.constant 0 : i32
    return %c0_i32, %c0_i32_0 : i32, i32
  }
  func.func @transform_2(%arg0: i32, %arg1: i32) -> (i32, i32) {
    %c0_i32 = arith.constant 0 : i32
    %c0_i32_0 = arith.constant 0 : i32
    %c0_i32_1 = arith.constant 0 : i32
    return %c0_i32, %c0_i32_0 : i32, i32
  }
  func.func @transform_3(%arg0: i32, %arg1: i32) -> (i32, i32) {
    %c0_i32 = arith.constant 0 : i32
    return %arg0, %arg1 : i32, i32
  }
  func.func @transform_4(%arg0: i32, %arg1: i32) -> (i32, i32) {
    %c0_i32 = arith.constant 0 : i32
    return %arg0, %arg1 : i32, i32
  }
}

</mosaic_0001>

<bundles_post_ra>
// kernel: tpu_custom_call.1
= control target key start
LH: loop header
LB: loop body
LE: loop exit
PB: predicated region body
PF: predicated region fallthrough
CT: control target
= control target key end

     0   :  { %10 = vsyncpa [#allocation3], 0  ;;  %s1377_s0 = inlined_call_operand.vmem [shape: f32[2,32,256], index: 0, kind: input, shape index: {}]   ;;  %s1378_s1 = inlined_call_operand.vmem [shape: f32[256,16], index: 1, kind: input, shape index: {}]   ;;  %s1379_s2 = inlined_call_operand.vmem [shape: f32[256,16], index: 2, kind: input, shape index: {}]   ;;  %s1380_s3 = inlined_call_operand.hbm [shape: f32[32,32], index: 3, kind: output, shape index: {0}]   ;;  %s1381_s4 = inlined_call_operand.hbm [shape: f32[32,32], index: 4, kind: output, shape index: {1}]  }
   0x1   :  { %12 = vsyncpa [#allocation3 + $0x1], 0 }
   0x2   :  { %13 = vsyncpa [#allocation5], 0 }
   0x3   :  { %15 = vsyncpa [#allocation5 + $0x1], 0  ;;  %s1015_s15 = smov 0   ;;  %s1017_s16 = smov 0  }
   0x4   :  { %s1019_s17 = smov 0   ;;  %s1021_s18 = smov 0  }
   0x5   :  { %s1023_s19 = smov 0   ;;  %s1025_s20 = smov 0  }
   0x6 LB: > { %s707_s21 = sadd.s32 4294967295, %s984_s20   ;;  %s708_s22 = sadd.s32 4294967294, %s984_s20   ;;  %s984_s20 = sphi %s1025_s20, %s21_s20   ;;  %s980_s19 = sphi %s1023_s19, %s1388_s19   ;;  %s976_s18 = sphi %s1021_s18, %s1387_s18   ;;  %s972_s17 = sphi %s1019_s17, %s1386_s17   ;;  %s968_s16 = sphi %s1017_s16, %s1385_s16   ;;  %s964_s15 = sphi %s1015_s15, %s1384_s15  }
   0x7   : > { %s33_s23 = sadd.s32 1, %s980_s19  ;;  %s112_s24 = sadd.s32 1, %s972_s17 }
   0x8   : > { %p35_p0 = scmp.ge.s32.totalorder %s33_s23, 2  ;;  %p122_p1 = scmp.ne.s32.totalorder %s972_s17, %s968_s16 }
   0x9   : > { %p123_p2 = scmp.eq.s32.totalorder %s707_s21, 1  ;;  %p128_p3 = scmp.ne.s32.totalorder %s968_s16, %s964_s15 }
   0xa   : > { %s1390_s23 = smov (%p35_p0, %s33_s23), 0  ;;  %p129_p5 = scmp.eq.s32.totalorder %s708_s22, 1 }
   0xb   : > { %p1055_p4 = por %p123_p2, %p122_p1  ;;  %s107_s26 = ssub.s32 %s980_s19, %s1390_s23 }
   0xc   : > { %p711_p6 = scmp.ge.s32.totalorder %s984_s20, 1  ;;  %p110_p7 = scmp.eq.s32.totalorder %s107_s26, 0 }
   0xd   : > { %p1062_p8 = por %p129_p5, %p128_p3  ;;  %p195_p9 = scmp.lt.s32.totalorder %s984_s20, 3 }
   0xe   : > { %s1068_s28 = scalar_select %p110_p7, %s972_s17, %s112_s24  }
   0xf   : > { %p196_p10 = pnand %p711_p6, %p195_p9 }
  0x10   : > { %p232_p11 = scmp.lt.s32.totalorder (!%p196_p10), %s976_s18, 1  ;;  %s1283_s8 = sand.u32 (!%p196_p10), 1, %s968_s16  }
  0x11   : > { %199 = sbr.rel (%p196_p10) target bundleno = 420 (0x1a4), region = 32  ;;  %s712_s9 = sshll.u32 (!%p196_p10), %s1283_s8, 4 }
  0x12   : > { %s223_s10 = scalar_lea.vmem (!%p196_p10), [#allocation2], %s712_s9  ;;  %s725_s14 = sshll.u32 (!%p196_p10), %s976_s18, 8 }
  0x13   : > { %s230_s21 = scalar_lea.vmem (!%p196_p10), [#allocation4], %s712_s9  ;;  %s1294_s29 = scalar_lea.hbm (!%p196_p10), %s1380_s3, %s725_s14 }
  0x14   : > { %s592_s22 = sshll.u32 (!%p196_p10), %s230_s21, 4  ;;  %s1301_s30 = scalar_lea.hbm (!%p196_p10), %s1381_s4, %s725_s14  ;;  %s1296_s22 = int_to_ptr.vmem [resolvable:$true] %s592_s22 }
  0x15   : > { %s556_s5 = scalar_lea.sflag (!%p196_p10), [#allocation3], %s1283_s8  ;;  %s986_s6 = smov (!%p196_p10), [#allocation2]  }
  0x16   : > { %v283_v0 = vld [vmem:[%s1378_s1 + $0xf8] sm:$0xff]  ;;  %v282_v4 = vld [vmem:[%s1378_s1 + $0xf0] sm:$0xff]  ;;  %v281_v8 = vld [vmem:[%s1378_s1 + $0xe8] sm:$0xff]  ;;  %s1206_s11 = scalar_select %p232_p11, %s976_s18, 1  ;;  %vm518_vm0 = vcmask 261120  }
  0x17   : > { %v400_v1 = vld [vmem:[%s1379_s2 + $0xf8] sm:$0xff]  ;;  %727 = vmatprep.subr.mxu0 %v283_v0  ;;  %v399_v5 = vld [vmem:[%s1379_s2 + $0xf0] sm:$0xff]  ;;  %v398_v9 = vld [vmem:[%s1379_s2 + $0xe8] sm:$0xff]  ;;  %s882_s7 = sshll.u32 %s986_s6, 4  ;;  %s883_s7 = int_to_ptr.vmem [resolvable:$false] %s882_s7 }
  0x18   : > { %v267_v2 = vld [vmem:[%s1378_s1 + $0x78] sm:$0xff]  ;;  %771 = vmatprep.subr.mxu1 %v400_v1  ;;  %v266_v6 = vld [vmem:[%s1378_s1 + $0x70] sm:$0xff]  ;;  %v265_v10 = vld [vmem:[%s1378_s1 + $0x68] sm:$0xff]  ;;  %s724_s13 = sshll.u32 %s1206_s11, 6  ;;  %s884_s9 = scalar_lea.vmem %s883_s7, 512 }
  0x19   : > { %v384_v3 = vld [vmem:[%s1379_s2 + $0x78] sm:$0xff]  ;;  %728 = vmatpush3.msra.mxu0 %v267_v2  ;;  %v383_v7 = vld [vmem:[%s1379_s2 + $0x70] sm:$0xff]  ;;  %v382_v11 = vld [vmem:[%s1379_s2 + $0x68] sm:$0xff]  ;;  %s1254_s12 = scalar_lea.vmem %s1377_s0, %s724_s13 }
  0x1a   : > { %772 = vmatpush3.msra.mxu1 %v384_v3  ;;  %729 = vmatprep.subr.mxu0 %v282_v4  ;;  %v280_v12 = vld [vmem:[%s1378_s1 + $0xe0] sm:$0xff]  ;;  %v279_v16 = vld [vmem:[%s1378_s1 + $0xd8] sm:$0xff]  ;;  %v278_v20 = vld [vmem:[%s1378_s1 + $0xd0] sm:$0xff] }
  0x1b   : > { %773 = vmatprep.subr.mxu1 %v399_v5  ;;  %730 = vmatpush3.msra.mxu0 %v266_v6  ;;  %v397_v13 = vld [vmem:[%s1379_s2 + $0xe0] sm:$0xff]  ;;  %v396_v17 = vld [vmem:[%s1379_s2 + $0xd8] sm:$0xff]  ;;  %v395_v21 = vld [vmem:[%s1379_s2 + $0xd0] sm:$0xff] }
  0x1c   : > { %774 = vmatpush3.msra.mxu1 %v383_v7  ;;  %731 = vmatprep.subr.mxu0 %v281_v8  ;;  %v264_v14 = vld [vmem:[%s1378_s1 + $0x60] sm:$0xff]  ;;  %v263_v18 = vld [vmem:[%s1378_s1 + $0x58] sm:$0xff]  ;;  %v262_v22 = vld [vmem:[%s1378_s1 + $0x50] sm:$0xff] }
  0x1d   : > { %775 = vmatprep.subr.mxu1 %v398_v9  ;;  %v381_v15 = vld [vmem:[%s1379_s2 + $0x60] sm:$0xff]  ;;  %732 = vmatpush3.msra.mxu0 %v265_v10  ;;  %v380_v19 = vld [vmem:[%s1379_s2 + $0x58] sm:$0xff]  ;;  %v379_v23 = vld [vmem:[%s1379_s2 + $0x50] sm:$0xff] }
  0x1e   : > { %776 = vmatpush3.msra.mxu1 %v382_v11  ;;  %733 = vmatprep.subr.mxu0 %v280_v12  ;;  %v277_v24 = vld [vmem:[%s1378_s1 + $0xc8] sm:$0xff]  ;;  %v276_v28 = vld [vmem:[%s1378_s1 + $0xc0] sm:$0xff]  ;;  %v275_v32 = vld [vmem:[%s1378_s1 + $0xb8] sm:$0xff] }
  0x1f   : > { %777 = vmatprep.subr.mxu1 %v397_v13  ;;  %734 = vmatpush3.msra.mxu0 %v264_v14  ;;  %v394_v25 = vld [vmem:[%s1379_s2 + $0xc8] sm:$0xff]  ;;  %v393_v29 = vld [vmem:[%s1379_s2 + $0xc0] sm:$0xff]  ;;  %v392_v33 = vld [vmem:[%s1379_s2 + $0xb8] sm:$0xff] }
  0x20   : > { %778 = vmatpush3.msra.mxu1 %v381_v15  ;;  %735 = vmatprep.subr.mxu0 %v279_v16  ;;  %v261_v26 = vld [vmem:[%s1378_s1 + $0x48] sm:$0xff]  ;;  %v260_v30 = vld [vmem:[%s1378_s1 + $0x40] sm:$0xff]  ;;  %v259_v34 = vld [vmem:[%s1378_s1 + $0x38] sm:$0xff] }
  0x21   : > { %779 = vmatprep.subr.mxu1 %v396_v17  ;;  %736 = vmatpush3.msra.mxu0 %v263_v18  ;;  %v378_v27 = vld [vmem:[%s1379_s2 + $0x48] sm:$0xff]  ;;  %v377_v31 = vld [vmem:[%s1379_s2 + $0x40] sm:$0xff]  ;;  %v376_v35 = vld [vmem:[%s1379_s2 + $0x38] sm:$0xff] }
  0x22   : > { %780 = vmatpush3.msra.mxu1 %v380_v19  ;;  %737 = vmatprep.subr.mxu0 %v278_v20  ;;  %v274_v36 = vld [vmem:[%s1378_s1 + $0xb0] sm:$0xff]  ;;  %v273_v40 = vld [vmem:[%s1378_s1 + $0xa8] sm:$0xff]  ;;  %v272_v44 = vld [vmem:[%s1378_s1 + $0xa0] sm:$0xff] }
  0x23   : > { %781 = vmatprep.subr.mxu1 %v395_v21  ;;  %738 = vmatpush3.msra.mxu0 %v262_v22  ;;  %v391_v37 = vld [vmem:[%s1379_s2 + $0xb0] sm:$0xff]  ;;  %v390_v41 = vld [vmem:[%s1379_s2 + $0xa8] sm:$0xff]  ;;  %v389_v45 = vld [vmem:[%s1379_s2 + $0xa0] sm:$0xff] }
  0x24   : > { %782 = vmatpush3.msra.mxu1 %v379_v23  ;;  %739 = vmatprep.subr.mxu0 %v277_v24  ;;  %v258_v38 = vld [vmem:[%s1378_s1 + $0x30] sm:$0xff]  ;;  %v257_v42 = vld [vmem:[%s1378_s1 + $0x28] sm:$0xff]  ;;  %v256_v46 = vld [vmem:[%s1378_s1 + $0x20] sm:$0xff] }
  0x25   : > { %783 = vmatprep.subr.mxu1 %v394_v25  ;;  %740 = vmatpush3.msra.mxu0 %v261_v26  ;;  %v375_v39 = vld [vmem:[%s1379_s2 + $0x30] sm:$0xff]  ;;  %v374_v43 = vld [vmem:[%s1379_s2 + $0x28] sm:$0xff]  ;;  %v373_v47 = vld [vmem:[%s1379_s2 + $0x20] sm:$0xff] }
  0x26   : > { %784 = vmatpush3.msra.mxu1 %v378_v27  ;;  %741 = vmatprep.subr.mxu0 %v276_v28  ;;  %v271_v48 = vld [vmem:[%s1378_s1 + $0x98] sm:$0xff]  ;;  %v270_v52 = vld [vmem:[%s1378_s1 + $0x90] sm:$0xff]  ;;  %v269_v56 = vld [vmem:[%s1378_s1 + $0x88] sm:$0xff] }
  0x27   : > { %785 = vmatprep.subr.mxu1 %v393_v29  ;;  %742 = vmatpush3.msra.mxu0 %v260_v30  ;;  %v388_v49 = vld [vmem:[%s1379_s2 + $0x98] sm:$0xff]  ;;  %v387_v53 = vld [vmem:[%s1379_s2 + $0x90] sm:$0xff]  ;;  %v386_v57 = vld [vmem:[%s1379_s2 + $0x88] sm:$0xff] }
  0x28   : > { %786 = vmatpush3.msra.mxu1 %v377_v31  ;;  %743 = vmatprep.subr.mxu0 %v275_v32  ;;  %v255_v50 = vld [vmem:[%s1378_s1 + $0x18] sm:$0xff]  ;;  %v254_v54 = vld [vmem:[%s1378_s1 + $0x10] sm:$0xff]  ;;  %v253_v58 = vld [vmem:[%s1378_s1 + $0x8] sm:$0xff] }
  0x29   : > { %787 = vmatprep.subr.mxu1 %v392_v33  ;;  %744 = vmatpush3.msra.mxu0 %v259_v34  ;;  %v372_v51 = vld [vmem:[%s1379_s2 + $0x18] sm:$0xff]  ;;  %v371_v55 = vld [vmem:[%s1379_s2 + $0x10] sm:$0xff]  ;;  %v370_v59 = vld [vmem:[%s1379_s2 + $0x8] sm:$0xff] }
  0x2a   : > { %788 = vmatpush3.msra.mxu1 %v376_v35  ;;  %745 = vmatprep.subr.mxu0 %v274_v36  ;;  %v268_v60 = vld [vmem:[%s1378_s1 + $0x80] sm:$0xff]  ;;  %v245_v63 = vld [vmem:[%s1254_s12 + $0x8] sm:$0xff]  ;;  %v247_v2 = vld [vmem:[%s1254_s12 + $0x18] sm:$0xff] }
  0x2b   : > { %789 = vmatprep.subr.mxu1 %v391_v37  ;;  %746 = vmatpush3.msra.mxu0 %v258_v38  ;;  %v385_v61 = vld [vmem:[%s1379_s2 + $0x80] sm:$0xff]  ;;  %v246_v3 = vld [vmem:[%s1254_s12 + $0x10] sm:$0xff]  ;;  %v249_v4 = vld [vmem:[%s1254_s12 + $0x28] sm:$0xff] }
  0x2c   : > { %790 = vmatpush3.msra.mxu1 %v375_v39  ;;  %747 = vmatprep.subr.mxu0 %v273_v40  ;;  %v252_v62 = vld [vmem:[%s1378_s1] sm:$0xff]  ;;  %v251_v6 = vld [vmem:[%s1254_s12 + $0x38] sm:$0xff]  ;;  %v250_v7 = vld [vmem:[%s1254_s12 + $0x30] sm:$0xff] }
  0x2d   : > { %791 = vmatprep.subr.mxu1 %v390_v41  ;;  %748 = vmatpush3.msra.mxu0 %v257_v42  ;;  %v369_v0 = vld [vmem:[%s1379_s2] sm:$0xff] }
  0x2e   : > { %792 = vmatpush3.msra.mxu1 %v374_v43  ;;  %749 = vmatprep.subr.mxu0 %v272_v44  ;;  %v244_v1 = vld [vmem:[%s1254_s12] sm:$0xff] }
  0x2f   : > { %793 = vmatprep.subr.mxu1 %v389_v45  ;;  %750 = vmatpush3.msra.mxu0 %v256_v46  ;;  %v248_v5 = vld [vmem:[%s1254_s12 + $0x20] sm:$0xff]  ;;  %s575_s12 = sshll.u32 %s223_s10, 4  ;;  %s1289_s12 = int_to_ptr.vmem [resolvable:$true] %s575_s12 }
  0x30   : > { %794 = vmatpush3.msra.mxu1 %v373_v47  ;;  %751 = vmatprep.subr.mxu0 %v271_v48  ;;  %s878_s11 = scalar_lea.vmem %s1289_s12, 256  ;;  %p885_p1 = scmp.lt.s32.totalorder %s1289_s12, %s883_s7 }
  0x31   : > { %795 = vmatprep.subr.mxu1 %v388_v49  ;;  %752 = vmatpush3.msra.mxu0 %v255_v50  ;;  %p879_p12 = scmp.ne.s32.totalorder %s1289_s12, %s878_s11  ;;  %p886_p2 = scmp.lt.s32.totalorder %s884_s9, %s878_s11 }
  0x32   : > { %796 = vmatpush3.msra.mxu1 %v372_v51  ;;  %753 = vmatprep.subr.mxu0 %v270_v52 }
  0x33   : > { %797 = vmatprep.subr.mxu1 %v387_v53  ;;  %754 = vmatpush3.msra.mxu0 %v254_v54  ;;  %p880_p13 = pnand %p879_p12, %p1055_p4  ;;  %p887_p3 = por %p886_p2, %p885_p1 }
  0x34   : > { %798 = vmatpush3.msra.mxu1 %v371_v55  ;;  %755 = vmatprep.subr.mxu0 %v269_v56 }
  0x35   : > { %799 = vmatprep.subr.mxu1 %v386_v57  ;;  %756 = vmatpush3.msra.mxu0 %v253_v58  ;;  %p881_p0 = pneg %p880_p13 }
  0x36   : > { %800 = vmatpush3.msra.mxu1 %v370_v59  ;;  %757 = vmatprep.subr.mxu0 %v268_v60 }
  0x37   : > { %801 = vmatprep.subr.mxu1 %v385_v61  ;;  %758 = vmatpush3.msra.mxu0 %v252_v62  ;;  %p888_p5 = pnand %p887_p3, %p881_p0 }
  0x38   : > { %348 = vmatprep.mubr.f32.mxu0 %v245_v63  ;;  %802 = vmatpush3.msra.mxu1 %v369_v0 }
  0x39   : > { %465 = vmatprep.mubr.f32.mxu1 %v245_v63  ;;  %349 = vmatmul.mubr.f32.vlgmr.msra.gmra.mxu0 %v244_v1 }
  0x3a   : > { %466 = vmatmul.mubr.f32.vlgmr.msra.gmra.mxu1 %v244_v1  ;;  %353 = vmatprep.mubr.f32.mxu0 %v247_v2 }
  0x3b   : > { %470 = vmatprep.mubr.f32.mxu1 %v247_v2 }
  0x3d   : > { %354 = vmatmul.mubr.f32.gmra.mxu0 %v246_v3 }
  0x3e   : > { %471 = vmatmul.mubr.f32.gmra.mxu1 %v246_v3  ;;  %358 = vmatprep.mubr.f32.mxu0 %v249_v4 }
  0x3f   : > { %475 = vmatprep.mubr.f32.mxu1 %v249_v4 }
  0x41   : > { %359 = vmatmul.mubr.f32.gmra.mxu0 %v248_v5 }
  0x42   : > { %476 = vmatmul.mubr.f32.gmra.mxu1 %v248_v5  ;;  %363 = vmatprep.mubr.f32.mxu0 %v251_v6 }
  0x43   : > { %480 = vmatprep.mubr.f32.mxu1 %v251_v6 }
  0x45   : > { %364 = vmatmul.mubr.f32.gmra.mxu0 %v250_v7 }
  0x46   : > { %481 = vmatmul.mubr.f32.gmra.mxu1 %v250_v7 }
  0xf9   : > { %v759_v8 = vpop.f32.mrf.mxu0 }
  0xfa   : > { %v803_v9 = vpop.f32.mrf.mxu1 }
  0xfb   : > { %v760_v10 = vpop.f32.mrf.mxu0 }
  0xfc   : > { %v804_v11 = vpop.f32.mrf.mxu1  ;;  %v761_v13 = vadd.f32 %v760_v10, %v759_v8 }
  0xfd   : > { %v805_v12 = vadd.f32 %v804_v11, %v803_v9  ;;  %v762_v14 = vpop.f32.mrf.mxu0 }
  0xfe   : > { %v806_v15 = vpop.f32.mrf.mxu1  ;;  %486 = vxpose.xlu0.b32.start [1/4] (short) (narrow) %v761_v13, 16 }
  0xff   : > { %521 = vxpose.xlu1.b32.start [1/4] (short) (narrow) %v805_v12, 16  ;;  %v763_v16 = vpop.f32.mrf.mxu0 }
 0x100   : > { %v807_v17 = vpop.f32.mrf.mxu1  ;;  %v764_v18 = vadd.f32 %v763_v16, %v762_v14 }
 0x101   : > { %v808_v19 = vadd.f32 %v807_v17, %v806_v15  ;;  %v765_v20 = vpop.f32.mrf.mxu0 }
 0x102   : > { %v809_v21 = vpop.f32.mrf.mxu1  ;;  %487 = vxpose.xlu0.b32.cont [2/4] (short) (narrow) %v764_v18, 16 }
 0x103   : > { %522 = vxpose.xlu1.b32.cont [2/4] (short) (narrow) %v808_v19, 16  ;;  %v766_v22 = vpop.f32.mrf.mxu0 }
 0x104   : > { %v810_v23 = vpop.f32.mrf.mxu1  ;;  %v767_v24 = vadd.f32 %v766_v22, %v765_v20 }
 0x105   : > { %v811_v25 = vadd.f32 %v810_v23, %v809_v21  ;;  %v768_v26 = vpop.f32.mrf.mxu0 }
 0x106   : > { %v812_v27 = vpop.f32.mrf.mxu1  ;;  %488 = vxpose.xlu0.b32.cont [3/4] (short) (narrow) %v767_v24, 16 }
 0x107   : > { %523 = vxpose.xlu1.b32.cont [3/4] (short) (narrow) %v811_v25, 16  ;;  %v769_v28 = vpop.f32.mrf.mxu0 }
 0x108   : > { %v813_v29 = vpop.f32.mrf.mxu1  ;;  %v770_v30 = vadd.f32 %v769_v28, %v768_v26 }
 0x109   : > { %v814_v31 = vadd.f32 %v813_v29, %v812_v27 }
 0x10a   : > { %489 = vxpose.xlu0.b32.end [4/4] (short) (narrow) %v770_v30, 16 }
 0x10b   : > { %524 = vxpose.xlu1.b32.end [4/4] (short) (narrow) %v814_v31, 16 }
 0x17a   : > { %v502_v33 = vpop.trf.xlu0 }
 0x17b   : > { %v537_v32 = vpop.trf.xlu1  ;;  %519 = vst.msk [vmem:[%s223_s10] sm:$0xff] %vm518_vm0, %v502_v33 }
 0x17c   : > { %553 = vst.msk [vmem:[%s230_s21] sm:$0xff] %vm518_vm0, %v537_v32 }
 0x17e   : > { %v503_v35 = vpop.trf.xlu0 }
 0x17f   : > { %v538_v34 = vpop.trf.xlu1  ;;  %520 = vst.msk [vmem:[%s223_s10 + $0x8] sm:$0xff] %vm518_vm0, %v503_v35 }
 0x180   : > { %554 = vst.msk [vmem:[%s230_s21 + $0x8] sm:$0xff] %vm518_vm0, %v538_v34 }
 0x181   : > { %891 = shalt.err (!%p888_p5)
}
 0x182   : > { %s892_s10 = scalar_lea.hbm %s1294_s29, 256  ;;  %s896_s24 = scalar_lea.hbm %s1380_s3, 512 }
 0x183   : > { %p893_p6 = scmp.ne.s32.totalorder %s1294_s29, %s892_s10  ;;  %p897_p10 = scmp.lt.s32.totalorder %s1294_s29, %s1380_s3 }
 0x184   : > { %p898_p11 = scmp.lt.s32.totalorder %s896_s24, %s892_s10 }
 0x185   : > { %p894_p7 = pnand %p893_p6, %p1055_p4 }
 0x186   : > { %p899_p12 = por %p898_p11, %p897_p10 }
 0x187   : > { %p895_p9 = pneg %p894_p7 }
 0x189   : > { %p900_p13 = pnand %p899_p12, %p895_p9 }
 0x18b   : > { %903 = shalt.err (!%p900_p13)
}
 0x18c   : > { %s987_s13 = smov 128   ;;  %s988_s11 = smov 8  }
 0x18d   : > { %815 = dma.vmem_to_hbm [thread:$0]  (%p1055_p4), %s1289_s12, 256, %s1294_s29, %s556_s5, %s987_s13, %s987_s13, %s988_s11  }
 0x18e   : > { %s561_s6 = scalar_lea.sflag [#allocation5], %s1283_s8  ;;  %s904_s7 = scalar_lea.vmem %s1296_s22, 256 }
 0x18f   : > { %p905_p0 = scmp.ne.s32.totalorder %s1296_s22, %s904_s7  ;;  %s989_s9 = smov [#allocation4]  }
 0x190   : > { %s908_s10 = sshll.u32 %s989_s9, 4  ;;  %s909_s10 = int_to_ptr.vmem [resolvable:$false] %s908_s10 }
 0x191   : > { %p906_p1 = pnand %p905_p0, %p1055_p4  ;;  %s910_s14 = scalar_lea.vmem %s909_s10, 512 }
 0x192   : > { %p911_p3 = scmp.lt.s32.totalorder %s1296_s22, %s909_s10  ;;  %p912_p5 = scmp.lt.s32.totalorder %s910_s14, %s904_s7 }
 0x193   : > { %p907_p2 = pneg %p906_p1 }
 0x194   : > { %p913_p6 = por %p912_p5, %p911_p3 }
 0x196   : > { %p914_p7 = pnand %p913_p6, %p907_p2 }
 0x198   : > { %917 = shalt.err (!%p914_p7)
}
 0x199   : > { %s918_s12 = scalar_lea.hbm %s1301_s30, 256  ;;  %s922_s5 = scalar_lea.hbm %s1381_s4, 512 }
 0x19a   : > { %p919_p9 = scmp.ne.s32.totalorder %s1301_s30, %s918_s12  ;;  %p923_p12 = scmp.lt.s32.totalorder %s1301_s30, %s1381_s4 }
 0x19b   : > { %p924_p13 = scmp.lt.s32.totalorder %s922_s5, %s918_s12 }
 0x19c   : > { %p920_p10 = pnand %p919_p9, %p1055_p4 }
 0x19d   : > { %p925_p0 = por %p924_p13, %p923_p12 }
 0x19e   : > { %p921_p11 = pneg %p920_p10 }
 0x1a0   : > { %p926_p1 = pnand %p925_p0, %p921_p11 }
 0x1a2   : > { %929 = shalt.err (!%p926_p1)
}
 0x1a3   : > { %816 = dma.vmem_to_hbm [thread:$0]  (%p1055_p4), %s1296_s22, 256, %s1301_s30, %s561_s6, %s987_s13, %s987_s13, %s988_s11  }
 0x1a4 PF: > { %p826_p2 = scmp.ge.s32.totalorder %s984_s20, 2  ;;  %s607_s26 = sand.u32 1, %s964_s15  }
 0x1a5   : > { %s608_s18 = scalar_lea.sflag [#allocation3], %s607_s26 }
 0x1a6   : > { %p820_p3 = pnand %p826_p2, %p1062_p8 }
 0x1a8   : > { %p821_p5 = pneg %p820_p3 }
 0x1aa   : > { %955 = dma.done.wait (%p821_p5), %s608_s18, 256  }
 0x1ab   : > { %957 = vsyncadd (%p821_p5), %s608_s18, 4294967040  ;;  %s617_s7 = scalar_lea.sflag [#allocation5], %s607_s26 }
 0x1ac   : > { %959 = dma.done.wait (%p821_p5), %s617_s7, 256  }
 0x1ad   : > { %961 = vsyncadd (%p821_p5), %s617_s7, 4294967040  ;;  %s21_s20 = sadd.s32 1, %s984_s20   ;;  %s1384_s15 = smov %s968_s16 }
 0x1ae   : > { %p18_p6 = scmp.ge.s32.totalorder %s21_s20, 4   ;;  %s1385_s16 = smov %s972_s17 }
 0x1af   : > { %s1386_s17 = smov %s1068_s28  ;;  %s1387_s18 = smov %s980_s19 }
 0x1b0   : > { %s1388_s19 = smov %s1390_s23  ;;  %20 = sbr.rel (!%p18_p6) target bundleno = 6 (0x6), region = 84 }
 0x1b5   :  { %622 = vsyncpa [#allocation3], 1 }
 0x1b6   :  { %624 = vsyncpa [#allocation3 + $0x1], 1 }
 0x1b7   :  { %625 = vsyncpa [#allocation5], 1 }
 0x1b8   :  { %627 = vsyncpa [#allocation5 + $0x1], 1 }

</bundles_post_ra>
